<compile_context>
chip_gen: v6e
topology: v6e:2x2x1
jax: 0.10.0
libtpu: 0.0.40
codegen_flags: <defaults>
</compile_context>

<pallas_src>
import jax
import jax.numpy as jnp
from jax.experimental import pallas as pl
from jax.experimental.pallas import tpu as pltpu

_LANE = 128
_SUBLANE = 8


def _cdiv(a, b):
    return (a + b - 1) // b


def _round_up(x, m):
    return ((x + m - 1) // m) * m


def _rnn_agent_kernel(x_ref, w1_ref, b1_ref, w2_ref, b2_ref, w3_ref, b3_ref,
                      out_ref):
    # x streams in as f32 (unpadded K); matmul operands bf16, accumulation f32.
    x = x_ref[...].astype(jnp.bfloat16)
    # fc1 + relu
    z1 = jnp.dot(x, w1_ref[...], preferred_element_type=jnp.float32) + b1_ref[...]
    a1 = jnp.maximum(z1, 0.0).astype(jnp.bfloat16)
    # "rnn" Linear + relu; h cast to bf16 once, reused for fc2 matmul and store.
    z2 = jnp.dot(a1, w2_ref[...], preferred_element_type=jnp.float32) + b2_ref[...]
    h_b = jnp.maximum(z2, 0.0).astype(jnp.bfloat16)
    # fc2: w3/b3 columns were pre-shifted to [H, H+A) at prep time, so q lands in
    # lanes where h is exactly zero; the packed slab is simply h + q.
    q = jnp.dot(h_b, w3_ref[...], preferred_element_type=jnp.float32) + b3_ref[...]
    out_ref[...] = h_b + q.astype(jnp.bfloat16)


def init_params(key, input_shape, hidden_dim, n_actions):
    """PyTorch nn.Linear-style init: U(-1/sqrt(fan_in), +1/sqrt(fan_in)).
    Weights stored pre-transposed as (in, out), f32, unpadded."""
    ks = jax.random.split(key, 6)

    def lin(kw, kb, fan_in, fan_out):
        bound = 1.0 / jnp.sqrt(jnp.float32(fan_in))
        w = jax.random.uniform(kw, (fan_in, fan_out), jnp.float32, -bound, bound)
        b = jax.random.uniform(kb, (1, fan_out), jnp.float32, -bound, bound)
        return w, b

    w1, b1 = lin(ks[0], ks[1], input_shape, hidden_dim)
    w2, b2 = lin(ks[2], ks[3], hidden_dim, hidden_dim)
    w3, b3 = lin(ks[4], ks[5], hidden_dim, n_actions)
    return {"w1": w1, "b1": b1, "w2": w2, "b2": b2, "w3": w3, "b3": b3}


def prepare_params(params):
    """One-time packing/padding of parameters for the kernel.

    P = round_up(H + A, 128) is the packed lane-dense width. Hidden axes are
    zero-padded to P; fc2 (w3/b3) columns are placed at offset H so q lands in
    lanes [H, H+A) of the packed output while h occupies [0, H). Matmul
    operands are bf16; biases stay f32 (added to the f32 accumulator)."""
    w1, b1 = params["w1"], params["b1"]
    w2, b2 = params["w2"], params["b2"]
    w3, b3 = params["w3"], params["b3"]
    D_in, H = w1.shape
    A = w3.shape[1]
    P = _round_up(H + A, _LANE)

    w1p = jnp.zeros((D_in, P), jnp.float32).at[:, :H].set(w1)
    b1p = jnp.zeros((1, P), jnp.float32).at[:, :H].set(b1)
    w2p = jnp.zeros((P, P), jnp.float32).at[:H, :H].set(w2)
    b2p = jnp.zeros((1, P), jnp.float32).at[:, :H].set(b2)
    w3p = jnp.zeros((P, P), jnp.float32).at[:H, H:H + A].set(w3)
    b3p = jnp.zeros((1, P), jnp.float32).at[:, H:H + A].set(b3)

    prepared = {
        "w1": w1p.astype(jnp.bfloat16), "b1": b1p,
        "w2": w2p.astype(jnp.bfloat16), "b2": b2p,
        "w3": w3p.astype(jnp.bfloat16), "b3": b3p,
    }
    dims = {"D_in": D_in, "H": H, "A": A, "P": P}
    return prepared, dims


def _pick_batch_tile(B):
    target = 1024                        # big tiles amortize ~0.35us/step overhead
    n_tiles = max(1, _cdiv(B, target))
    if B >= 2 * _SUBLANE:
        n_tiles = max(n_tiles, 2)        # >=2 tiles so v7x shards across its 2 TCs
    tb = _round_up(_cdiv(B, n_tiles), _SUBLANE)   # balanced, sublane-aligned tiles
    return tb, _cdiv(B, tb)


def rnn_agent_forward(inputs, hidden_state, prepared, dims):
    """Pallas forward. hidden_state is unused (use_rnn == False), kept for parity.
    Returns (q, h) as bf16 slices of the packed kernel output."""
    del hidden_state  # unused when use_rnn == False (matches the PyTorch module)
    B, D_in = inputs.shape
    assert D_in == dims["D_in"]
    H, A, P = dims["H"], dims["A"], dims["P"]

    tb, num_tiles = _pick_batch_tile(B)

    # Advisory cost estimate (real flops / dominant bytes).
    flops = 2 * B * (D_in * H + H * H + H * A)
    bytes_accessed = (B * D_in * 4            # x (f32 in)
                      + B * P * 2             # packed bf16 out
                      + (D_in * P + 2 * P * P) * 2 + 3 * P * 4)  # params (once)

    packed = pl.pallas_call(
        _rnn_agent_kernel,
        out_shape=jax.ShapeDtypeStruct((B, P), jnp.bfloat16),
        grid_spec=pl.GridSpec(
            grid=(num_tiles,),
            in_specs=[
                pl.BlockSpec((tb, D_in), lambda i: (i, 0)),   # x: streamed f32
                pl.BlockSpec((D_in, P), lambda i: (0, 0)),    # w1 (VMEM-resident)
                pl.BlockSpec((1, P), lambda i: (0, 0)),       # b1
                pl.BlockSpec((P, P), lambda i: (0, 0)),       # w2
                pl.BlockSpec((1, P), lambda i: (0, 0)),       # b2
                pl.BlockSpec((P, P), lambda i: (0, 0)),       # w3 (col-shifted)
                pl.BlockSpec((1, P), lambda i: (0, 0)),       # b3 (col-shifted)
            ],
            out_specs=pl.BlockSpec((tb, P), lambda i: (i, 0)),  # packed [h | q]
        ),
        compiler_params=pltpu.CompilerParams(
            dimension_semantics=("parallel",)),   # batch tiles across TCs on v7x
        cost_estimate=pl.CostEstimate(
            flops=flops, transcendentals=0, bytes_accessed=bytes_accessed),
    )(inputs, prepared["w1"], prepared["b1"], prepared["w2"], prepared["b2"],
      prepared["w3"], prepared["b3"])

    q = packed[:, H:H + A]
    h = packed[:, :H]
    return q, h


def reference_forward(inputs, params):
    """Pure f32 reference matching the PyTorch module."""
    a1 = jnp.maximum(inputs @ params["w1"] + params["b1"], 0.0)
    h = jnp.maximum(a1 @ params["w2"] + params["b2"], 0.0)
    q = h @ params["w3"] + params["b3"]
    return q, h


if __name__ == "__main__":
    # Small shapes consistent with the module's forward (default env branch):
    batch = 2
    input_shape = 32        # input_shape
    hidden_dim = 32         # args.hidden_dim
    n_actions = 8           # args.n_actions

    key = jax.random.PRNGKey(0)
    k_in, k_p = jax.random.split(key, 2)
    inputs = jax.random.normal(k_in, (batch, input_shape), jnp.float32)
    hidden_state = jnp.zeros((batch, hidden_dim), jnp.float32)  # init_hidden()-like
    params = init_params(k_p, input_shape, hidden_dim, n_actions)

    prepared, dims = prepare_params(params)   # one-time padding / packing / bf16 cast

    q, h = rnn_agent_forward(inputs, hidden_state, prepared, dims)
    q = jax.block_until_ready(q)
    h = jax.block_until_ready(h)

    # f32 reference; kernel uses bf16 operands / bf16 outputs with f32 accumulation.
    # TODO(synk): bf16 q can flip argmax for near-tied Q-values vs the f32 module.
    q_ref, h_ref = reference_forward(inputs, params)
    assert q.shape == q_ref.shape and h.shape == h_ref.shape
    assert jnp.allclose(q.astype(jnp.float32), q_ref, atol=5e-2, rtol=5e-2), \
        "q mismatch vs reference"
    assert jnp.allclose(h.astype(jnp.float32), h_ref, atol=5e-2, rtol=5e-2), \
        "h mismatch vs reference"

    print("KERNEL_OK")
</pallas_src>

<mosaic_0001>
module attributes {stable_mosaic.version = 11 : i64} {
  func.func @_rnn_agent_kernel(%arg0: i32, %arg1: memref<8x32xf32, #tpu.memory_space<vmem>>, %arg2: memref<32x128xbf16, #tpu.memory_space<vmem>>, %arg3: memref<1x128xf32, #tpu.memory_space<vmem>>, %arg4: memref<128x128xbf16, #tpu.memory_space<vmem>>, %arg5: memref<1x128xf32, #tpu.memory_space<vmem>>, %arg6: memref<128x128xbf16, #tpu.memory_space<vmem>>, %arg7: memref<1x128xf32, #tpu.memory_space<vmem>>, %arg8: memref<8x128xbf16, #tpu.memory_space<vmem>>) attributes {dimension_semantics = [#tpu.dimension_semantics<parallel>], iteration_bounds = array<i64: 1>, scalar_prefetch = 0 : i64, scratch_operands = 0 : i64, tpu.core_type = #tpu.core_type<tc>, window_params = [{transform_indices = @transform_0, window_bounds = array<i64: 8, 32>}, {pipeline_mode = #tpu.pipeline_mode<synchronous>, transform_indices = @transform_1, window_bounds = array<i64: 32, 128>}, {pipeline_mode = #tpu.pipeline_mode<synchronous>, transform_indices = @transform_2, window_bounds = array<i64: 1, 128>}, {pipeline_mode = #tpu.pipeline_mode<synchronous>, transform_indices = @transform_3, window_bounds = array<i64: 128, 128>}, {pipeline_mode = #tpu.pipeline_mode<synchronous>, transform_indices = @transform_4, window_bounds = array<i64: 1, 128>}, {pipeline_mode = #tpu.pipeline_mode<synchronous>, transform_indices = @transform_5, window_bounds = array<i64: 128, 128>}, {pipeline_mode = #tpu.pipeline_mode<synchronous>, transform_indices = @transform_6, window_bounds = array<i64: 1, 128>}, {transform_indices = @transform_7, window_bounds = array<i64: 8, 128>}]} {
    %c0 = arith.constant 0 : index
    %c0_0 = arith.constant 0 : index
    %0 = vector.load %arg1[%c0, %c0_0] : memref<8x32xf32, #tpu.memory_space<vmem>>, vector<8x32xf32>
    %1 = arith.truncf %0 : vector<8x32xf32> to vector<8x32xbf16>
    %c0_1 = arith.constant 0 : index
    %c0_2 = arith.constant 0 : index
    %2 = vector.load %arg2[%c0_1, %c0_2] : memref<32x128xbf16, #tpu.memory_space<vmem>>, vector<32x128xbf16>
    %cst = arith.constant dense<0.000000e+00> : vector<8x128xf32>
    %3 = tpu.matmul %1, %2, %cst {dimension_numbers = #tpu.dot_dimension_numbers<[1], [0], [0], [1], [0, 0, 1, 1], [], []>} : vector<8x32xbf16>, vector<32x128xbf16>, vector<8x128xf32> -> vector<8x128xf32>
    %c0_3 = arith.constant 0 : index
    %c0_4 = arith.constant 0 : index
    %4 = vector.load %arg3[%c0_3, %c0_4] : memref<1x128xf32, #tpu.memory_space<vmem>>, vector<1x128xf32>
    %5 = vector.broadcast %4 : vector<1x128xf32> to vector<8x128xf32>
    %6 = arith.addf %3, %5 : vector<8x128xf32>
    %cst_5 = arith.constant 0.000000e+00 : f32
    %7 = vector.broadcast %cst_5 : f32 to vector<8x128xf32>
    %8 = arith.maximumf %6, %7 : vector<8x128xf32>
    %9 = arith.truncf %8 : vector<8x128xf32> to vector<8x128xbf16>
    %c0_6 = arith.constant 0 : index
    %c0_7 = arith.constant 0 : index
    %10 = vector.load %arg4[%c0_6, %c0_7] : memref<128x128xbf16, #tpu.memory_space<vmem>>, vector<128x128xbf16>
    %cst_8 = arith.constant dense<0.000000e+00> : vector<8x128xf32>
    %11 = tpu.matmul %9, %10, %cst_8 {dimension_numbers = #tpu.dot_dimension_numbers<[1], [0], [0], [1], [0, 0, 1, 1], [], []>} : vector<8x128xbf16>, vector<128x128xbf16>, vector<8x128xf32> -> vector<8x128xf32>
    %c0_9 = arith.constant 0 : index
    %c0_10 = arith.constant 0 : index
    %12 = vector.load %arg5[%c0_9, %c0_10] : memref<1x128xf32, #tpu.memory_space<vmem>>, vector<1x128xf32>
    %13 = vector.broadcast %12 : vector<1x128xf32> to vector<8x128xf32>
    %14 = arith.addf %11, %13 : vector<8x128xf32>
    %cst_11 = arith.constant 0.000000e+00 : f32
    %15 = vector.broadcast %cst_11 : f32 to vector<8x128xf32>
    %16 = arith.maximumf %14, %15 : vector<8x128xf32>
    %17 = arith.truncf %16 : vector<8x128xf32> to vector<8x128xbf16>
    %c0_12 = arith.constant 0 : index
    %c0_13 = arith.constant 0 : index
    %18 = vector.load %arg6[%c0_12, %c0_13] : memref<128x128xbf16, #tpu.memory_space<vmem>>, vector<128x128xbf16>
    %cst_14 = arith.constant dense<0.000000e+00> : vector<8x128xf32>
    %19 = tpu.matmul %17, %18, %cst_14 {dimension_numbers = #tpu.dot_dimension_numbers<[1], [0], [0], [1], [0, 0, 1, 1], [], []>} : vector<8x128xbf16>, vector<128x128xbf16>, vector<8x128xf32> -> vector<8x128xf32>
    %c0_15 = arith.constant 0 : index
    %c0_16 = arith.constant 0 : index
    %20 = vector.load %arg7[%c0_15, %c0_16] : memref<1x128xf32, #tpu.memory_space<vmem>>, vector<1x128xf32>
    %21 = vector.broadcast %20 : vector<1x128xf32> to vector<8x128xf32>
    %22 = arith.addf %19, %21 : vector<8x128xf32>
    %23 = arith.truncf %22 : vector<8x128xf32> to vector<8x128xbf16>
    %24 = arith.addf %17, %23 : vector<8x128xbf16>
    %c0_17 = arith.constant 0 : index
    %c0_18 = arith.constant 0 : index
    %25 = vector.load %arg8[%c0_17, %c0_18] : memref<8x128xbf16, #tpu.memory_space<vmem>>, vector<8x128xbf16>
    tpu.vector_store %arg8[%c0_17, %c0_18], %24 {strides = array<i32>} : memref<8x128xbf16, #tpu.memory_space<vmem>>, vector<8x128xbf16>,
    return
  }
  func.func @transform_0(%arg0: i32) -> (i32, i32) {
    %c0_i32 = arith.constant 0 : i32
    %c0_i32_0 = arith.constant 0 : i32
    return %arg0, %c0_i32 : i32, i32
  }
  func.func @transform_1(%arg0: i32) -> (i32, i32) {
    %c0_i32 = arith.constant 0 : i32
    %c0_i32_0 = arith.constant 0 : i32
    %c0_i32_1 = arith.constant 0 : i32
    return %c0_i32, %c0_i32_0 : i32, i32
  }
  func.func @transform_2(%arg0: i32) -> (i32, i32) {
    %c0_i32 = arith.constant 0 : i32
    %c0_i32_0 = arith.constant 0 : i32
    %c0_i32_1 = arith.constant 0 : i32
    return %c0_i32, %c0_i32_0 : i32, i32
  }
  func.func @transform_3(%arg0: i32) -> (i32, i32) {
    %c0_i32 = arith.constant 0 : i32
    %c0_i32_0 = arith.constant 0 : i32
    %c0_i32_1 = arith.constant 0 : i32
    return %c0_i32, %c0_i32_0 : i32, i32
  }
  func.func @transform_4(%arg0: i32) -> (i32, i32) {
    %c0_i32 = arith.constant 0 : i32
    %c0_i32_0 = arith.constant 0 : i32
    %c0_i32_1 = arith.constant 0 : i32
    return %c0_i32, %c0_i32_0 : i32, i32
  }
  func.func @transform_5(%arg0: i32) -> (i32, i32) {
    %c0_i32 = arith.constant 0 : i32
    %c0_i32_0 = arith.constant 0 : i32
    %c0_i32_1 = arith.constant 0 : i32
    return %c0_i32, %c0_i32_0 : i32, i32
  }
  func.func @transform_6(%arg0: i32) -> (i32, i32) {
    %c0_i32 = arith.constant 0 : i32
    %c0_i32_0 = arith.constant 0 : i32
    %c0_i32_1 = arith.constant 0 : i32
    return %c0_i32, %c0_i32_0 : i32, i32
  }
  func.func @transform_7(%arg0: i32) -> (i32, i32) {
    %c0_i32 = arith.constant 0 : i32
    %c0_i32_0 = arith.constant 0 : i32
    return %arg0, %c0_i32 : i32, i32
  }
}

</mosaic_0001>

<bundles_post_ra>
// kernel: tpu_custom_call.1
= control target key start
LH: loop header
LB: loop body
LE: loop exit
PB: predicated region body
PF: predicated region fallthrough
CT: control target
= control target key end

     0   :  { %12 = vsyncpa [#allocation3], 0  ;;  %s776_s0 = inlined_call_operand.hbm [shape: f32[2,32], index: 0, kind: input, shape index: {}]   ;;  %s777_s1 = inlined_call_operand.hbm [shape: bf16[32,128], index: 1, kind: input, shape index: {}]   ;;  %s778_s2 = inlined_call_operand.vmem [shape: f32[1,128], index: 2, kind: input, shape index: {}]   ;;  %s779_s3 = inlined_call_operand.hbm [shape: bf16[128,128], index: 3, kind: input, shape index: {}]   ;;  %s780_s4 = inlined_call_operand.vmem [shape: f32[1,128], index: 4, kind: input, shape index: {}]   ;;  %s781_s5 = inlined_call_operand.hbm [shape: bf16[128,128], index: 5, kind: input, shape index: {}]   ;;  %s782_s6 = inlined_call_operand.vmem [shape: f32[1,128], index: 6, kind: input, shape index: {}]   ;;  %s783_s7 = inlined_call_operand.hbm [shape: bf16[2,128], index: 7, kind: output, shape index: {}]  }
   0x1   :  { %13 = vsyncpa [#allocation6], 0 }
   0x2   :  { %14 = vsyncpa [#allocation9], 0 }
   0x3   :  { %15 = vsyncpa [#allocation4], 0 }
   0x4   :  { %20 = vsyncadd [#allocation3], 96  ;;  %s665_s24 = smov [#allocation5]  }
   0x5   :  { %s33_s25 = sshll.u32 %s665_s24, 4  ;;  %s34_s25 = int_to_ptr.vmem [resolvable:$true] %s33_s25 }
   0x6   :  { %s565_s26 = scalar_lea.vmem %s34_s25, 256  ;;  %p570_p1 = scmp.lt.s32.totalorder %s34_s25, %s34_s25 }
   0x7   :  { %p566_p0 = scmp.ne.s32.totalorder %s34_s25, %s565_s26  ;;  %p571_p2 = scmp.lt.s32.totalorder %s565_s26, %s565_s26 }
   0x9   :  { %p572_p3 = por %p571_p2, %p570_p1 }
   0xb   :  { %p573_p4 = pnand %p572_p3, %p566_p0 }
   0xd   :  { %576 = shalt.err (!%p573_p4)
}
   0xe   :  { %s666_s27 = smov 64   ;;  %s667_s28 = smov 4  }
   0xf   :  { %39 = dma.hbm_to_vmem [thread:$0]  %s777_s1, 256, %s34_s25, [#allocation6], %s666_s27, %s666_s27, %s667_s28  }
  0x10   :  { %s668_s8 = smov [#allocation2]  }
  0x11   :  { %s21_s9 = sshll.u32 %s668_s8, 4  ;;  %s22_s9 = int_to_ptr.vmem [resolvable:$true] %s21_s9 }
  0x12   :  { %s585_s10 = scalar_lea.vmem %s22_s9, 32  ;;  %s589_s11 = scalar_lea.vmem %s22_s9, 128 }
  0x13   :  { %p586_p5 = scmp.ne.s32.totalorder %s22_s9, %s585_s10  ;;  %p590_p6 = scmp.lt.s32.totalorder %s22_s9, %s22_s9 }
  0x14   :  { %p591_p7 = scmp.lt.s32.totalorder %s589_s11, %s585_s10 }
  0x16   :  { %p592_p8 = por %p591_p7, %p590_p6 }
  0x18   :  { %p593_p9 = pnand %p592_p8, %p586_p5 }
  0x1a   :  { %596 = shalt.err (!%p593_p9)
}
  0x1b   :  { %s669_s12 = smov 32   ;;  %s670_s13 = smov 2  }
  0x1c   :  { %27 = dma.hbm_to_vmem [thread:$0]  %s776_s0, 32, %s22_s9, [#allocation3], %s669_s12, %s669_s12, %s670_s13  }
  0x1d   :  { %s671_s16 = smov [#allocation7]   ;;  %s672_s1 = smov [#allocation8]  }
  0x1e   :  { %s47_s17 = sshll.u32 %s671_s16, 4  ;;  %s61_s18 = sshll.u32 %s672_s1, 4  ;;  %s48_s17 = int_to_ptr.vmem [resolvable:$true] %s47_s17  ;;  %s62_s18 = int_to_ptr.vmem [resolvable:$true] %s61_s18 }
  0x1f   :  { %s605_s19 = scalar_lea.vmem %s48_s17, 1024  ;;  %p610_p11 = scmp.lt.s32.totalorder %s48_s17, %s48_s17 }
  0x20   :  { %p606_p10 = scmp.ne.s32.totalorder %s48_s17, %s605_s19  ;;  %p611_p12 = scmp.lt.s32.totalorder %s605_s19, %s605_s19 }
  0x22   :  { %p612_p13 = por %p611_p12, %p610_p11 }
  0x24   :  { %p613_p0 = pnand %p612_p13, %p606_p10 }
  0x26   :  { %616 = shalt.err (!%p613_p0)
}
  0x27   :  { %53 = dma.hbm_to_vmem [thread:$0]  %s779_s3, 1024, %s48_s17, [#allocation6], %s666_s27, %s666_s27, %s667_s28  }
  0x28   :  { %s625_s0 = scalar_lea.vmem %s62_s18, 1024  ;;  %p630_p2 = scmp.lt.s32.totalorder %s62_s18, %s62_s18 }
  0x29   :  { %p626_p1 = scmp.ne.s32.totalorder %s62_s18, %s625_s0  ;;  %p631_p3 = scmp.lt.s32.totalorder %s625_s0, %s625_s0 }
  0x2b   :  { %p632_p4 = por %p631_p3, %p630_p2 }
  0x2d   :  { %p633_p5 = pnand %p632_p4, %p626_p1 }
  0x2f   :  { %636 = shalt.err (!%p633_p5)
}
  0x30   :  { %67 = dma.hbm_to_vmem [thread:$0]  %s781_s5, 1024, %s62_s18, [#allocation9], %s666_s27, %s666_s27, %s667_s28  }
  0x31   :  { %657 = dma.done.wait [#allocation3], 128  }
  0x32   :  { %658 = vsyncadd [#allocation3], 4294967168 }
  0x33   :  { %659 = dma.done.wait [#allocation6], 1280  }
  0x34   :  { %660 = vsyncadd [#allocation6], 4294966016 }
  0x35   :  { %661 = dma.done.wait [#allocation9], 1024  }
  0x36   :  { %662 = vsyncadd [#allocation9], 4294966272  ;;  %v673_v0 = vmov 0.0   ;;  %vm674_vm0 = vmmov 0   ;;  %v539_v1 = vld [vmem:[#allocation5 + $0x8] sm:$0xff]   ;;  %v540_v2 = vld [vmem:[#allocation5] sm:$0xff]   ;;  %v384_v39 = vlaneseq }
  0x37   :  { %477 = vmatprep.subr.bf16.mxu0 %v673_v0  ;;  %481 = vmatprep.mubr.msk.bf16.mxu0 %vm674_vm0, %v673_v0  ;;  %v83_v3 = vld [vmem:[#allocation2] sm:$0xff]  ;;  %v541_v4 = vld [vmem:[#allocation7 + $0x38] sm:$0xff]   ;;  %v542_v6 = vld [vmem:[#allocation7 + $0x30] sm:$0xff]   ;;  %vm108_vm1 = vcmask 261120   ;;  %v675_v37 = vmov 1966171168  }
  0x38   :  { %485 = vmatprep.subr.bf16.mxu1 %v673_v0  ;;  %501 = vmatprep.mubr.msk.bf16.mxu1 %vm674_vm0, %v673_v0  ;;  %v84_v5 = vpack.c.bf16 %v83_v3, %v83_v3  ;;  %v543_v7 = vld [vmem:[#allocation7 + $0x28] sm:$0xff]   ;;  %v544_v8 = vld [vmem:[#allocation7 + $0x20] sm:$0xff]   ;;  %v545_v9 = vld [vmem:[#allocation7 + $0x18] sm:$0xff]   ;;  %v382_v38 = vunpack.c.l.s4 %v675_v37  ;;  %v385_v42 = vshrl.u32 %v384_v39, 7 }
  0x39   :  { %478 = vmatpush3.bf16.msra.mxu0 %v539_v1  ;;  %486 = vmatpush3.bf16.msra.mxu1 %v541_v4  ;;  %v546_v10 = vld [vmem:[#allocation7 + $0x10] sm:$0xff]   ;;  %v547_v11 = vld [vmem:[#allocation7 + $0x8] sm:$0xff]   ;;  %v548_v12 = vld [vmem:[#allocation7] sm:$0xff]  }
  0x3a   :  { %479 = vmatprep.subr.bf16.mxu0 %v673_v0  ;;  %487 = vmatprep.subr.bf16.mxu1 %v673_v0  ;;  %v549_v13 = vld [vmem:[#allocation8 + $0x38] sm:$0xff]   ;;  %v550_v14 = vld [vmem:[#allocation8 + $0x30] sm:$0xff]   ;;  %v551_v15 = vld [vmem:[#allocation8 + $0x28] sm:$0xff]   ;;  %v383_v41 = vunpack.c.0.s8 %v382_v38 }
  0x3b   :  { %v552_v16 = vld [vmem:[#allocation8 + $0x20] sm:$0xff]   ;;  %v553_v17 = vld [vmem:[#allocation8 + $0x18] sm:$0xff]   ;;  %v554_v18 = vld [vmem:[#allocation8 + $0x10] sm:$0xff]  }
  0x3c   :  { %v432_v19 = vld [vmem:[%s778_s2] ss:$0 sm:$0xff]  ;;  %v556_v28 = vld [vmem:[#allocation8] sm:$0xff]   ;;  %v386_v47 = vsub.s32 %v383_v41, %v385_v42 }
  0x3d   :  { %480 = vmatpush3.bf16.msra.mxu0 %v540_v2  ;;  %488 = vmatpush3.bf16.msra.mxu1 %v542_v6  ;;  %v555_v27 = vld [vmem:[#allocation8 + $0x8] sm:$0xff]  }
  0x3e   :  { %505 = vmatprep.subr.bf16.mxu0 %v673_v0  ;;  %489 = vmatprep.subr.bf16.mxu1 %v673_v0  ;;  %v436_v29 = vld [vmem:[%s780_s4] ss:$0 sm:$0xff] }
  0x3f   :  { %v445_v40 = vld [vmem:[%s782_s6] ss:$0 sm:$0xff] }
  0x40   :  { %482 = vmatmul.mubr.msk.bf16.vlgmr.msra.gmra.mxu0 %vm108_vm1, %v84_v5 }
  0x41   :  { %521 = vmatprep.mubr.msk.bf16.mxu0 %vm674_vm0, %v673_v0  ;;  %490 = vmatpush3.bf16.msra.mxu1 %v543_v7 }
  0x42   :  { %491 = vmatprep.subr.bf16.mxu1 %v673_v0  ;;  %506 = vmatpush3.bf16.msra.mxu0 %v549_v13 }
  0x43   :  { %507 = vmatprep.subr.bf16.mxu0 %v673_v0 }
  0x45   :  { %492 = vmatpush3.bf16.msra.mxu1 %v544_v8 }
  0x46   :  { %493 = vmatprep.subr.bf16.mxu1 %v673_v0  ;;  %508 = vmatpush3.bf16.msra.mxu0 %v550_v14 }
  0x47   :  { %509 = vmatprep.subr.bf16.mxu0 %v673_v0 }
  0x49   :  { %494 = vmatpush3.bf16.msra.mxu1 %v545_v9 }
  0x4a   :  { %495 = vmatprep.subr.bf16.mxu1 %v673_v0  ;;  %510 = vmatpush3.bf16.msra.mxu0 %v551_v15 }
  0x4b   :  { %511 = vmatprep.subr.bf16.mxu0 %v673_v0 }
  0x4d   :  { %496 = vmatpush3.bf16.msra.mxu1 %v546_v10 }
  0x4e   :  { %497 = vmatprep.subr.bf16.mxu1 %v673_v0  ;;  %512 = vmatpush3.bf16.msra.mxu0 %v552_v16 }
  0x4f   :  { %513 = vmatprep.subr.bf16.mxu0 %v673_v0 }
  0x51   :  { %498 = vmatpush3.bf16.msra.mxu1 %v547_v11 }
  0x52   :  { %499 = vmatprep.subr.bf16.mxu1 %v673_v0  ;;  %514 = vmatpush3.bf16.msra.mxu0 %v553_v17 }
  0x53   :  { %515 = vmatprep.subr.bf16.mxu0 %v673_v0 }
  0x55   :  { %500 = vmatpush3.bf16.msra.mxu1 %v548_v12 }
  0x56   :  { %516 = vmatpush3.bf16.msra.mxu0 %v554_v18 }
  0x57   :  { %517 = vmatprep.subr.bf16.mxu0 %v673_v0 }
  0x5a   :  { %518 = vmatpush3.bf16.msra.mxu0 %v555_v27 }
  0x5b   :  { %519 = vmatprep.subr.bf16.mxu0 %v673_v0 }
  0x5e   :  { %520 = vmatpush3.bf16.msra.mxu0 %v556_v28 }
 0x100   :  { %v146_v20 = vpop.f32.mrf.mxu0 }
 0x101   :  { %v147_v21 = vadd.f32 %v432_v19, %v146_v20 }
 0x102   :  { %v483_v22 = vpop.f32.mrf.mxu0 }
 0x103   :  { %v152_v23 = vmax.f32 %v147_v21, 0.0 }
 0x104   :  { %v149_v24 = vpop.f32.mrf.mxu0 }
 0x105   :  { %v153_v25 = vpack.c.bf16 %v152_v23, %v152_v23 }
 0x106   :  { %v484_v26 = vpop.f32.mrf.mxu0 }
 0x107   :  { %502 = vmatmul.mubr.bf16.vlgmr.msra.gmra.mxu1 %v153_v25 }
 0x1c7   :  { %v259_v30 = vpop.f32.mrf.mxu1 }
 0x1c8   :  { %v260_v31 = vadd.f32 %v436_v29, %v259_v30 }
 0x1c9   :  { %v503_v32 = vpop.f32.mrf.mxu1 }
 0x1ca   :  { %v265_v33 = vmax.f32 %v260_v31, 0.0 }
 0x1cb   :  { %v262_v34 = vpop.f32.mrf.mxu1 }
 0x1cc   :  { %v266_v35 = vpack.c.bf16 %v265_v33, %v265_v33 }
 0x1cd   :  { %v504_v36 = vpop.f32.mrf.mxu1 }
 0x1ce   :  { %522 = vmatmul.mubr.bf16.vlgmr.msra.gmra.mxu0 %v266_v35 }
 0x28e   :  { %v372_v43 = vpop.f32.mrf.mxu0 }
 0x28f   :  { %v373_v44 = vadd.f32 %v445_v40, %v372_v43 }
 0x290   :  { %v523_v45 = vpop.f32.mrf.mxu0 }
 0x291   :  { %v378_v46 = vpack.c.bf16 %v373_v44, %v373_v44 }
 0x292   :  { %v375_v48 = vpop.f32.mrf.mxu0 }
 0x293   :  { %v379_v49 = vadd.bf16 %v378_v46, %v266_v35 }
 0x294   :  { %v524_v50 = vpop.f32.mrf.mxu0 }
 0x295   :  { %v387_v51 = vrot.slane %v379_v49, %v386_v47 }
 0x297   :  { %v388_v52 = vcombine.high %v387_v51, %v387_v51  ;;  %v395_v53 = vrot.slane %v387_v51, %v386_v47  ;;  %454 = vst.sshfl [vmem:[#allocation10] sm:$0x1 pattern:$0x73625140] %v387_v51 }
 0x299   :  { %v402_v54 = vrot.slane %v388_v52, %v386_v47  ;;  %v403_v55 = vcombine.high %v395_v53, %v395_v53  ;;  %455 = vst.sshfl [vmem:[#allocation10 + $0x1] sm:$0x1 pattern:$0x73625140] %v388_v52 }
 0x29b   :  { %v404_v56 = vcombine.high %v402_v54, %v402_v54  ;;  %411 = vst [vmem:[#allocation10 + $0x2] sm:$0x1] %v403_v55 }
 0x29d   :  { %412 = vst [vmem:[#allocation10 + $0x3] sm:$0x1] %v404_v56 }
 0x29e   :  { %417 = vsyncadd [#allocation4], 48  ;;  %s676_s4 = smov [#allocation10]  }
 0x29f   :  { %s418_s6 = sshll.u32 %s676_s4, 4  ;;  %s419_s6 = int_to_ptr.vmem [resolvable:$true] %s418_s6 }
 0x2a0   :  { %s637_s27 = scalar_lea.vmem %s419_s6, 16  ;;  %s641_s28 = scalar_lea.vmem %s419_s6, 64 }
 0x2a1   :  { %p638_p6 = scmp.ne.s32.totalorder %s419_s6, %s637_s27  ;;  %p642_p7 = scmp.lt.s32.totalorder %s419_s6, %s419_s6 }
 0x2a2   :  { %p643_p8 = scmp.lt.s32.totalorder %s641_s28, %s637_s27 }
 0x2a4   :  { %p644_p9 = por %p643_p8, %p642_p7 }
 0x2a6   :  { %p645_p10 = pnand %p644_p9, %p638_p6 }
 0x2a8   :  { %648 = shalt.err (!%p645_p10)
}
 0x2a9   :  { %s677_s29 = smov 16   ;;  %s678_s30 = smov 1  }
 0x2aa   :  { %424 = dma.vmem_to_hbm [thread:$0]  %s419_s6, 16, %s783_s7, [#allocation4], %s677_s29, %s677_s29, %s678_s30  }
 0x2ab   :  { %663 = dma.done.wait [#allocation4], 64  }
 0x2ac   :  { %664 = vsyncadd [#allocation4], 4294967232 }
 0x2ad   :  { %428 = vsyncpa [#allocation3], 1 }
 0x2ae   :  { %429 = vsyncpa [#allocation6], 1 }
 0x2af   :  { %430 = vsyncpa [#allocation9], 1 }
 0x2b0   :  { %431 = vsyncpa [#allocation4], 1 }

</bundles_post_ra>
